<compile_context>
chip_gen: v7x
topology: tpu7x:2x2x1
jax: 0.10.0
libtpu: 0.0.40
codegen_flags: <defaults>
</compile_context>

<pallas_src>
import functools

import jax
import jax.numpy as jnp
from jax.experimental import pallas as pl
from jax.experimental.pallas import tpu as pltpu


def _word_dropout_kernel(x_ref, r_ref, rep_ref, o_ref, *, dropprob):
    # r_ref: (TR, 1) uniform[0,1) per row; rep_ref: (1, H) replacement row.
    drop = r_ref[...] < jnp.float32(dropprob)            # (TR, 1) bool
    # One select per vreg: dropped rows take replacement (zeros when the
    # caller gave none), kept rows pass through unchanged.
    o_ref[...] = jnp.where(drop, rep_ref[...], x_ref[...])


def _choose_tile_rows(rows, hidden, itemsize):
    # Sublane multiple: 8 for 4-byte, 16 for 2-byte, 32 for 1-byte dtypes.
    sub = max(8, 32 // max(1, itemsize))
    # ~4 MiB per x block; with double-buffered x + out this stays well under
    # the scoped-VMEM defaults on v5e (16 MiB), v6e (32 MiB) and v7x (32/64).
    target_bytes = 4 * 1024 * 1024
    tr = target_bytes // max(1, hidden * itemsize)
    tr = max(sub, min(tr, 2048))
    tr = (tr // sub) * sub
    rows_rounded = ((rows + sub - 1) // sub) * sub
    return min(tr, rows_rounded)


def word_dropout(x, rng, dropprob, replacement=None, training=True):
    """JAX/Pallas equivalent of WordDropout.forward.

    x:           (..., hidden) float array
    rng:         jax PRNG key (or python int seed)
    replacement: optional (hidden,) vector written into dropped positions
    """
    if (not training) or dropprob == 0.0:
        return x

    if isinstance(rng, int):
        rng = jax.random.PRNGKey(rng)

    *lead, H = x.shape
    rows = 1
    for d in lead:
        rows *= d
    x2 = x.reshape(rows, H)

    if replacement is None:
        rep = jnp.zeros((1, H), dtype=x.dtype)
    else:
        rep = jnp.asarray(replacement, dtype=x.dtype).reshape(1, H)

    itemsize = jnp.dtype(x.dtype).itemsize
    tr = _choose_tile_rows(rows, H, itemsize)
    rows_padded = pl.cdiv(rows, tr) * tr

    # One uniform random per (padded) row == torch.rand(*masksize).
    r = jax.random.uniform(rng, (rows_padded, 1), dtype=jnp.float32)

    if rows_padded != rows:
        x2 = jnp.pad(x2, ((0, rows_padded - rows), (0, 0)))

    kernel = functools.partial(_word_dropout_kernel, dropprob=float(dropprob))
    grid = (rows_padded // tr,)

    out2 = pl.pallas_call(
        kernel,
        out_shape=jax.ShapeDtypeStruct((rows_padded, H), x.dtype),
        grid=grid,
        in_specs=[
            pl.BlockSpec((tr, H), lambda i: (i, 0)),   # x row-tile
            pl.BlockSpec((tr, 1), lambda i: (i, 0)),   # per-row randoms
            pl.BlockSpec((1, H), lambda i: (0, 0)),    # replacement (resident)
        ],
        out_specs=pl.BlockSpec((tr, H), lambda i: (i, 0)),
        compiler_params=pltpu.CompilerParams(
            dimension_semantics=("parallel",)),
        cost_estimate=pl.CostEstimate(
            flops=0, transcendentals=0,
            bytes_accessed=2 * rows_padded * H * itemsize),
    )(x2, r, rep)

    if rows_padded != rows:
        out2 = out2[:rows]
    return out2.reshape(*lead, H)


if __name__ == "__main__":
    key = jax.random.PRNGKey(0)
    kx, kr, kd = jax.random.split(key, 3)

    batch, seq, hidden = 2, 8, 32
    x = jax.random.normal(kx, (batch, seq, hidden), dtype=jnp.float32)
    replacement = jax.random.normal(kr, (hidden,), dtype=jnp.float32)

    dropprob = 0.5
    out = word_dropout(x, kd, dropprob, replacement=replacement, training=True)
    out = jax.block_until_ready(out)
    assert out.shape == x.shape and out.dtype == x.dtype

    # Sanity: every (batch, seq) row is either kept verbatim or fully replaced.
    out_rows = out.reshape(-1, hidden)
    x_rows = x.reshape(-1, hidden)
    for i in range(out_rows.shape[0]):
        kept = bool(jnp.allclose(out_rows[i], x_rows[i], atol=1e-6))
        dropped = bool(jnp.allclose(out_rows[i], replacement, atol=1e-6))
        assert kept or dropped, f"row {i} is neither kept nor replaced"

    # replacement=None path: dropped rows become all-zero (masked_fill only).
    out0 = jax.block_until_ready(word_dropout(x, kd, dropprob, training=True))
    out0_rows = out0.reshape(-1, hidden)
    for i in range(out0_rows.shape[0]):
        kept = bool(jnp.allclose(out0_rows[i], x_rows[i], atol=1e-6))
        dropped = bool(jnp.allclose(out0_rows[i], 0.0, atol=1e-6))
        assert kept or dropped, f"row {i} is neither kept nor zeroed"

    # Eval mode / p=0 passthrough.
    out_eval = word_dropout(x, kd, dropprob, training=False)
    assert bool(jnp.allclose(out_eval, x))
    out_p0 = word_dropout(x, kd, 0.0, training=True)
    assert bool(jnp.allclose(out_p0, x))

    print("KERNEL_OK")
</pallas_src>

<mosaic_0001>
module attributes {stable_mosaic.version = 11 : i64} {
  func.func @_word_dropout_kernel(%arg0: i32, %arg1: memref<16x32xf32, #tpu.memory_space<vmem>>, %arg2: memref<16x1xf32, #tpu.memory_space<vmem>>, %arg3: memref<1x32xf32, #tpu.memory_space<vmem>>, %arg4: memref<16x32xf32, #tpu.memory_space<vmem>>) attributes {dimension_semantics = [#tpu.dimension_semantics<parallel>], iteration_bounds = array<i64: 1>, scalar_prefetch = 0 : i64, scratch_operands = 0 : i64, tpu.core_type = #tpu.core_type<tc>, window_params = [{transform_indices = @transform_0, window_bounds = array<i64: 16, 32>}, {transform_indices = @transform_1, window_bounds = array<i64: 16, 1>}, {pipeline_mode = #tpu.pipeline_mode<synchronous>, transform_indices = @transform_2, window_bounds = array<i64: 1, 32>}, {transform_indices = @transform_3, window_bounds = array<i64: 16, 32>}]} {
    %c0 = arith.constant 0 : index
    %c0_0 = arith.constant 0 : index
    %0 = vector.load %arg2[%c0, %c0_0] : memref<16x1xf32, #tpu.memory_space<vmem>>, vector<16x1xf32>
    %cst = arith.constant 5.000000e-01 : f32
    %1 = vector.broadcast %cst : f32 to vector<16x1xf32>
    %2 = arith.cmpf olt, %0, %1 : vector<16x1xf32>
    %c0_1 = arith.constant 0 : index
    %c0_2 = arith.constant 0 : index
    %3 = vector.load %arg3[%c0_1, %c0_2] : memref<1x32xf32, #tpu.memory_space<vmem>>, vector<1x32xf32>
    %c0_3 = arith.constant 0 : index
    %c0_4 = arith.constant 0 : index
    %4 = vector.load %arg1[%c0_3, %c0_4] : memref<16x32xf32, #tpu.memory_space<vmem>>, vector<16x32xf32>
    %5 = vector.shape_cast %2 : vector<16x1xi1> to vector<16x1xi1>
    %6 = vector.broadcast %5 : vector<16x1xi1> to vector<16x32xi1>
    %7 = vector.shape_cast %3 : vector<1x32xf32> to vector<1x32xf32>
    %8 = vector.broadcast %7 : vector<1x32xf32> to vector<16x32xf32>
    %9 = arith.select %6, %8, %4 : vector<16x32xi1>, vector<16x32xf32>
    %c0_5 = arith.constant 0 : index
    %c0_6 = arith.constant 0 : index
    %10 = vector.load %arg4[%c0_5, %c0_6] : memref<16x32xf32, #tpu.memory_space<vmem>>, vector<16x32xf32>
    tpu.vector_store %arg4[%c0_5, %c0_6], %9 {strides = array<i32>} : memref<16x32xf32, #tpu.memory_space<vmem>>, vector<16x32xf32>,
    return
  }
  func.func @transform_0(%arg0: i32) -> (i32, i32) {
    %c0_i32 = arith.constant 0 : i32
    %c0_i32_0 = arith.constant 0 : i32
    return %arg0, %c0_i32 : i32, i32
  }
  func.func @transform_1(%arg0: i32) -> (i32, i32) {
    %c0_i32 = arith.constant 0 : i32
    %c0_i32_0 = arith.constant 0 : i32
    return %arg0, %c0_i32 : i32, i32
  }
  func.func @transform_2(%arg0: i32) -> (i32, i32) {
    %c0_i32 = arith.constant 0 : i32
    %c0_i32_0 = arith.constant 0 : i32
    %c0_i32_1 = arith.constant 0 : i32
    return %c0_i32, %c0_i32_0 : i32, i32
  }
  func.func @transform_3(%arg0: i32) -> (i32, i32) {
    %c0_i32 = arith.constant 0 : i32
    %c0_i32_0 = arith.constant 0 : i32
    return %arg0, %c0_i32 : i32, i32
  }
}

</mosaic_0001>

<bundles_post_ra>
// kernel: tpu_custom_call.1
= control target key start
LH: loop header
LB: loop body
LE: loop exit
PB: predicated region body
PF: predicated region fallthrough
CT: control target
= control target key end

     0   :  { %v89_v2 = vmov 0   ;;  %s140_s0 = inlined_call_operand.vmem [shape: f32[16,32], index: 0, kind: input, shape index: {}]   ;;  %s141_s1 = inlined_call_operand.vmem [shape: f32[16,1], index: 1, kind: input, shape index: {}]   ;;  %s142_s2 = inlined_call_operand.vmem [shape: f32[1,32], index: 2, kind: input, shape index: {}]   ;;  %s143_s3 = inlined_call_operand.hbm [shape: f32[16,32], index: 3, kind: output, shape index: {}]  }
   0x1   :  { %v15_v0 = vld [vmem:[%s141_s1] sm:$0xff]  ;;  %v16_v1 = vld [vmem:[%s141_s1 + $0x8] sm:$0xff]  ;;  %64 = vset.pattern.permute.xlu0 %v89_v2 }
   0x2   :  { %vm17_vm0 = vcmp.lt.f32.partialorder %v15_v0, 0.5  ;;  %vm18_vm1 = vcmp.lt.f32.partialorder %v16_v1, 0.5 }
   0x3   :  { %8 = vsyncpa [#allocation3], 0  ;;  %v22_v3 = vsel %vm17_vm0, 1, %v89_v2  ;;  %v23_v4 = vsel %vm18_vm1, 1, %v89_v2  ;;  %v59_v5 = vld [vmem:[%s142_s2] ss:$0 sm:$0xff] }
   0x4   :  { %25 = vperm.xlu0 %64, %v22_v3   ;;  %v20_v6 = vld [vmem:[%s140_s0] sm:$0xff]  ;;  %vm40_vm2 = vcmask 261120   ;;  %s90_s1 = smov [#allocation2]   ;;  %v21_v9 = vld [vmem:[%s140_s0 + $0x8] sm:$0xff] }
   0x5   :  { %s48_s20 = sshll.u32 %s90_s1, 4  ;;  %s49_s20 = int_to_ptr.vmem [resolvable:$true] %s48_s20 }
   0x6   :  { %s65_s2 = scalar_lea.vmem %s49_s20, 256  ;;  %p70_p1 = scmp.lt.s32.totalorder %s49_s20, %s49_s20 }
   0x7   :  { %p66_p0 = scmp.ne.s32.totalorder %s49_s20, %s65_s2  ;;  %p71_p2 = scmp.lt.s32.totalorder %s65_s2, %s65_s2 }
   0x8   :  { %28 = vperm.xlu0 %64, %v23_v4  }
   0x9   :  { %p72_p3 = por %p71_p2, %p70_p1 }
   0xb   :  { %p73_p4 = pnand %p72_p3, %p66_p0 }
  0x83   :  { %v26_v7 = vpop.permute.xlu0 %25 }
  0x84   :  { %vm30_vm3 = vcmp.eq.s32.totalorder %v26_v7, 1 }
  0x85   :  { %v38_v8 = vsel %vm30_vm3, %v59_v5, %v20_v6 }
  0x86   :  { %41 = vst.msk [vmem:[#allocation2] sm:$0xff] %vm40_vm2, %v38_v8 }
  0x87   :  { %v29_v10 = vpop.permute.xlu0 %28 }
  0x88   :  { %vm31_vm4 = vcmp.eq.s32.totalorder %v29_v10, 1 }
  0x89   :  { %v39_v11 = vsel %vm31_vm4, %v59_v5, %v21_v9 }
  0x8a   :  { %42 = vst.msk [vmem:[#allocation2 + $0x8] sm:$0xff] %vm40_vm2, %v39_v11 }
  0x8b   :  { %76 = shalt.err (!%p73_p4)
}
  0x8c   :  { %s77_s25 = scalar_lea.hbm %s143_s3, 256 }
  0x8d   :  { %p78_p5 = scmp.ne.s32.totalorder %s143_s3, %s77_s25  ;;  %p81_p6 = scmp.lt.u32.totalorder %s77_s25, %s143_s3 }
  0x8f   :  { %p83_p7 = pnand %p81_p6, %p78_p5 }
  0x91   :  { %86 = shalt.err (!%p83_p7)
}
  0x92   :  { %s91_s29 = smov 128   ;;  %s92_s30 = smov 8  }
  0x93   :  { %54 = dma.vmem_to_hbm [thread:$0]  %s49_s20, 256, %s143_s3, [#allocation3], %s91_s29, %s91_s29, %s92_s30  }
  0x94   :  { %87 = dma.done.wait [#allocation3], 256  }
  0x95   :  { %88 = vsyncadd [#allocation3], 4294967040 }
  0x96   :  { %58 = vsyncpa [#allocation3], 1 }

</bundles_post_ra>
